<compile_context>
chip_gen: v6e
topology: v6e:2x2x1
jax: 0.10.0
libtpu: 0.0.40
codegen_flags: <defaults>
</compile_context>

<pallas_src>
import jax
import jax.numpy as jnp
from jax.experimental import pallas as pl
from jax.experimental.pallas import tpu as pltpu


def channel_attention_kernel(x_ref, w1t_ref, w2t_ref, o_ref):
    # x_ref:   (Bt, HW, C)   channel-last, C on the lane axis
    # w1t_ref: (C, C//r)     fc1 weight, pre-transposed in the wrapper
    # w2t_ref: (C//r, C)     fc2 weight, pre-transposed in the wrapper
    # o_ref:   (Bt, HW, C)
    x = x_ref[...]

    # Global average pool over the spatial (sublane) axis, accumulated in f32.
    pooled = jnp.mean(x.astype(jnp.float32), axis=1)              # (Bt, C)

    # Tiny MLP in f32: (Bt, C) @ (C, h) -> ReLU -> (Bt, h) @ (h, C) -> sigmoid
    h = jnp.dot(pooled, w1t_ref[...].astype(jnp.float32),
                preferred_element_type=jnp.float32)               # (Bt, C//r)
    h = jnp.maximum(h, 0.0)
    y = jnp.dot(h, w2t_ref[...].astype(jnp.float32),
                preferred_element_type=jnp.float32)               # (Bt, C)
    y = jax.nn.sigmoid(y)

    # Scale: broadcast attention over the sublane (HW) axis; big elementwise
    # pass runs in the input dtype (halves store traffic for bf16 models).
    scale = y.astype(x.dtype)[:, None, :]                          # (Bt, 1, C)
    o_ref[...] = (x * scale).astype(o_ref.dtype)


def _pick_batch_tile(batch, per_sample_bytes, act_budget_bytes):
    """Largest batch-tile whose (double-buffered in + out) tiles fit the budget,
    preferring >=2 grid blocks so both v7x TensorCores get work."""
    divisors = [d for d in range(1, batch + 1) if batch % d == 0]
    fitting = [d for d in divisors if 4 * d * per_sample_bytes <= act_budget_bytes]
    if not fitting:
        # TODO(synk): if a single (HW, C) plane blows the budget, split into a
        # pooled-reduction pass + an HW-tiled scale pass instead.
        return 1
    multi_block = [d for d in fitting if batch // d >= 2]
    return max(multi_block) if multi_block else max(fitting)


def channel_attention(x, w1, w2):
    """x: (B, C, H, W); w1: (C//r, C); w2: (C, C//r). PyTorch Linear layouts."""
    B, C, H, W = x.shape
    hidden = w1.shape[0]
    HW = H * W

    # Channel-last, lane-dense layout (layout plumbing in the wrapper).
    x_cl = jnp.transpose(x, (0, 2, 3, 1)).reshape(B, HW, C)       # (B, HW, C)
    w1t = w1.T                                                    # (C, hidden)
    w2t = w2.T                                                    # (hidden, C)

    itemsize = jnp.dtype(x.dtype).itemsize
    per_sample = HW * C * itemsize
    act_budget = 32 * 1024 * 1024                                 # in+out, double-buffered
    bt = _pick_batch_tile(B, per_sample, act_budget)
    grid_b = B // bt

    w_bytes = (w1t.size + w2t.size) * jnp.dtype(w1.dtype).itemsize
    vmem_limit = int(min(56 * 1024 * 1024,
                         max(16 * 1024 * 1024,
                             4 * bt * per_sample + 2 * w_bytes + (2 << 20))))

    out_cl = pl.pallas_call(
        channel_attention_kernel,
        out_shape=jax.ShapeDtypeStruct((B, HW, C), x.dtype),
        grid_spec=pltpu.PrefetchScalarGridSpec(
            num_scalar_prefetch=0,
            grid=(grid_b,),
            in_specs=[
                pl.BlockSpec((bt, HW, C), lambda b: (b, 0, 0)),
                pl.BlockSpec((C, hidden), lambda b: (0, 0)),      # constant -> fetched once
                pl.BlockSpec((hidden, C), lambda b: (0, 0)),
            ],
            out_specs=pl.BlockSpec((bt, HW, C), lambda b: (b, 0, 0)),
        ),
        compiler_params=pltpu.CompilerParams(
            dimension_semantics=("parallel",),
            vmem_limit_bytes=vmem_limit,
        ),
    )(x_cl, w1t, w2t)

    return jnp.transpose(out_cl.reshape(B, H, W, C), (0, 3, 1, 2))


def reference(x, w1, w2):
    """Pure-JAX reference mirroring the PyTorch forward."""
    y = jnp.mean(x, axis=(2, 3))                 # (B, C)  adaptive avg pool to 1x1
    y = jnp.maximum(y @ w1.T, 0.0)               # (B, C//r)
    y = jax.nn.sigmoid(y @ w2.T)                 # (B, C)
    return x * y[:, :, None, None]


if __name__ == "__main__":
    key = jax.random.PRNGKey(0)
    B, C, H, W = 2, 16, 16, 16
    reduction = 8
    hidden = C // reduction

    kx, k1, k2 = jax.random.split(key, 3)
    x = jax.random.normal(kx, (B, C, H, W), dtype=jnp.float32)
    # Deterministic synthetic weights (shapes from nn.Linear in __init__)
    w1 = jax.random.normal(k1, (hidden, C), dtype=jnp.float32) * 0.1   # fc1 weight
    w2 = jax.random.normal(k2, (C, hidden), dtype=jnp.float32) * 0.1   # fc2 weight

    out = channel_attention(x, w1, w2)
    out = jax.block_until_ready(out)

    ref = reference(x, w1, w2)
    assert out.shape == (B, C, H, W)
    assert jnp.allclose(out, ref, atol=1e-5, rtol=1e-5), "mismatch vs reference"

    print("KERNEL_OK")
</pallas_src>

<mosaic_0001>
module attributes {stable_mosaic.version = 11 : i64} {
  func.func @channel_attention_kernel(%arg0: i32, %arg1: memref<1x256x16xf32, #tpu.memory_space<vmem>>, %arg2: memref<16x2xf32, #tpu.memory_space<vmem>>, %arg3: memref<2x16xf32, #tpu.memory_space<vmem>>, %arg4: memref<1x256x16xf32, #tpu.memory_space<vmem>>) attributes {dimension_semantics = [#tpu.dimension_semantics<parallel>], iteration_bounds = array<i64: 2>, scalar_prefetch = 0 : i64, scratch_operands = 0 : i64, tpu.core_type = #tpu.core_type<tc>, window_params = [{transform_indices = @transform_0, window_bounds = array<i64: 1, 256, 16>}, {pipeline_mode = #tpu.pipeline_mode<synchronous>, transform_indices = @transform_1, window_bounds = array<i64: 16, 2>}, {pipeline_mode = #tpu.pipeline_mode<synchronous>, transform_indices = @transform_2, window_bounds = array<i64: 2, 16>}, {transform_indices = @transform_3, window_bounds = array<i64: 1, 256, 16>}]} {
    %c0 = arith.constant 0 : index
    %c0_0 = arith.constant 0 : index
    %c0_1 = arith.constant 0 : index
    %0 = vector.load %arg1[%c0, %c0_0, %c0_1] : memref<1x256x16xf32, #tpu.memory_space<vmem>>, vector<1x256x16xf32>
    %cst = arith.constant dense<0.000000e+00> : vector<1x16xf32>
    %1 = vector.multi_reduction <add>, %0, %cst [1] : vector<1x256x16xf32> to vector<1x16xf32>
    %cst_2 = arith.constant 2.560000e+02 : f32
    %2 = vector.broadcast %cst_2 : f32 to vector<1x16xf32>
    %3 = arith.divf %1, %2 : vector<1x16xf32>
    %c0_3 = arith.constant 0 : index
    %c0_4 = arith.constant 0 : index
    %4 = vector.load %arg2[%c0_3, %c0_4] : memref<16x2xf32, #tpu.memory_space<vmem>>, vector<16x2xf32>
    %cst_5 = arith.constant dense<0.000000e+00> : vector<1x2xf32>
    %5 = tpu.matmul %3, %4, %cst_5 {dimension_numbers = #tpu.dot_dimension_numbers<[1], [0], [0], [1], [0, 0, 1, 1], [], []>} : vector<1x16xf32>, vector<16x2xf32>, vector<1x2xf32> -> vector<1x2xf32>
    %cst_6 = arith.constant 0.000000e+00 : f32
    %6 = vector.broadcast %cst_6 : f32 to vector<1x2xf32>
    %7 = arith.maximumf %5, %6 : vector<1x2xf32>
    %c0_7 = arith.constant 0 : index
    %c0_8 = arith.constant 0 : index
    %8 = vector.load %arg3[%c0_7, %c0_8] : memref<2x16xf32, #tpu.memory_space<vmem>>, vector<2x16xf32>
    %cst_9 = arith.constant dense<0.000000e+00> : vector<1x16xf32>
    %9 = tpu.matmul %7, %8, %cst_9 {dimension_numbers = #tpu.dot_dimension_numbers<[1], [0], [0], [1], [0, 0, 1, 1], [], []>} : vector<1x2xf32>, vector<2x16xf32>, vector<1x16xf32> -> vector<1x16xf32>
    %10 = arith.negf %9 : vector<1x16xf32>
    %11 = math.exp %10 : vector<1x16xf32>
    %cst_10 = arith.constant 1.000000e+00 : f32
    %12 = vector.broadcast %cst_10 : f32 to vector<1x16xf32>
    %13 = arith.addf %12, %11 : vector<1x16xf32>
    %14 = arith.divf %12, %13 : vector<1x16xf32>
    %15 = vector.shape_cast %14 : vector<1x16xf32> to vector<1x1x16xf32>
    %16 = vector.broadcast %15 : vector<1x1x16xf32> to vector<1x256x16xf32>
    %17 = arith.mulf %0, %16 : vector<1x256x16xf32>
    %c0_11 = arith.constant 0 : index
    %c0_12 = arith.constant 0 : index
    %c0_13 = arith.constant 0 : index
    %18 = vector.load %arg4[%c0_11, %c0_12, %c0_13] : memref<1x256x16xf32, #tpu.memory_space<vmem>>, vector<1x256x16xf32>
    tpu.vector_store %arg4[%c0_11, %c0_12, %c0_13], %17 {strides = array<i32>} : memref<1x256x16xf32, #tpu.memory_space<vmem>>, vector<1x256x16xf32>,
    return
  }
  func.func @transform_0(%arg0: i32) -> (i32, i32, i32) {
    %c0_i32 = arith.constant 0 : i32
    %c0_i32_0 = arith.constant 0 : i32
    %c0_i32_1 = arith.constant 0 : i32
    return %arg0, %c0_i32, %c0_i32_0 : i32, i32, i32
  }
  func.func @transform_1(%arg0: i32) -> (i32, i32) {
    %c0_i32 = arith.constant 0 : i32
    %c0_i32_0 = arith.constant 0 : i32
    %c0_i32_1 = arith.constant 0 : i32
    return %c0_i32, %c0_i32_0 : i32, i32
  }
  func.func @transform_2(%arg0: i32) -> (i32, i32) {
    %c0_i32 = arith.constant 0 : i32
    %c0_i32_0 = arith.constant 0 : i32
    %c0_i32_1 = arith.constant 0 : i32
    return %c0_i32, %c0_i32_0 : i32, i32
  }
  func.func @transform_3(%arg0: i32) -> (i32, i32, i32) {
    %c0_i32 = arith.constant 0 : i32
    %c0_i32_0 = arith.constant 0 : i32
    %c0_i32_1 = arith.constant 0 : i32
    return %arg0, %c0_i32, %c0_i32_0 : i32, i32, i32
  }
}

</mosaic_0001>

<bundles_post_ra>
// kernel: tpu_custom_call.1
= control target key start
LH: loop header
LB: loop body
LE: loop exit
PB: predicated region body
PF: predicated region fallthrough
CT: control target
= control target key end

     0   :  { %s637_s12 = smov 0   ;;  %s931_s0 = inlined_call_operand.vmem [shape: f32[2,256,16], index: 0, kind: input, shape index: {}]   ;;  %s932_s1 = inlined_call_operand.vmem [shape: f32[16,2], index: 1, kind: input, shape index: {}]   ;;  %s933_s2 = inlined_call_operand.vmem [shape: f32[2,16], index: 2, kind: input, shape index: {}]   ;;  %s934_s3 = inlined_call_operand.vmem [shape: f32[2,256,16], index: 3, kind: output, shape index: {}]  }
   0x1 LB: > { %s559_s13 = sadd.s32 4294967295, %s613_s12   ;;  %p563_p0 = scmp.ge.s32.totalorder %s613_s12, 1  ;;  %s613_s12 = sphi %s637_s12, %s13_s12  }
   0x2   : > { %p137_p1 = scmp.lt.s32.totalorder %s613_s12, 3 }
   0x4   : > { %p138_p2 = pnand %p563_p0, %p137_p1 }
   0x5   : > { %p161_p3 = scmp.lt.s32.totalorder (!%p138_p2), %s559_s13, 1 }
   0x6   : > { %141 = sbr.rel (%p138_p2) target bundleno = 533 (0x215), region = 32 }
   0xb   : > { %v276_v0 = vld [vmem:[%s932_s1 + $0x8] sm:$0xff]  ;;  %v615_v1 = vmov 0.0   ;;  %v275_v2 = vld [vmem:[%s932_s1] sm:$0xff]  ;;  %vm616_vm0 = vmmov 0   ;;  %s936_s13 = smov (!%p161_p3, %s559_s13), 1  ;;  %vm203_vm1 = vcmask 130048  }
   0xc   : > { %581 = vmatprep.subr.mxu0 %v615_v1  ;;  %585 = vmatprep.mubr.msk.f32.mxu0 %vm616_vm0, %v615_v1  ;;  %s574_s18 = sshll.u32 %s936_s13, 8  ;;  %vm356_vm2 = vcmask 1041408   ;;  %vm352_vm3 = vcmask 15360  }
   0xd   : > { %582 = vmatpush3.msra.mxu0 %v276_v0  ;;  %588 = vmatprep.subr.mxu1 %v615_v1  ;;  %s659_s21 = scalar_lea.vmem %s931_s0, %s574_s18  ;;  %s830_s26 = scalar_lea.vmem %s934_s3, %s574_s18 }
   0xe   : > { %583 = vmatprep.subr.mxu0 %v615_v1  ;;  %590 = vmatprep.mubr.msk.f32.mxu1 %vm616_vm0, %v615_v1  ;;  %v662_v3 = vld [vmem:[%s659_s21] sm:$0xff]  ;;  %v665_v4 = vld [vmem:[%s659_s21 + $0x8] sm:$0xff]  ;;  %v668_v5 = vld [vmem:[%s659_s21 + $0x10] sm:$0xff] }
   0xf   : > { %584 = vmatpush3.msra.mxu0 %v275_v2  ;;  %v671_v6 = vld [vmem:[%s659_s21 + $0x18] sm:$0xff]  ;;  %v204_v7 = vsel %vm203_vm1, %v662_v3, 0.0  ;;  %v205_v8 = vsel %vm203_vm1, %v665_v4, 0.0  ;;  %v207_v9 = vsel %vm203_vm1, %v668_v5, 0.0  ;;  %v680_v10 = vld [vmem:[%s659_s21 + $0x20] sm:$0xff]  ;;  %v685_v13 = vld [vmem:[%s659_s21 + $0x28] sm:$0xff] }
  0x10   : > { %v206_v11 = vadd.f32 %v205_v8, %v204_v7  ;;  %v209_v12 = vsel %vm203_vm1, %v671_v6, 0.0  ;;  %v211_v15 = vsel %vm203_vm1, %v680_v10, 0.0  ;;  %v690_v16 = vld [vmem:[%s659_s21 + $0x30] sm:$0xff]  ;;  %v213_v18 = vsel %vm203_vm1, %v685_v13, 0.0  ;;  %v695_v19 = vld [vmem:[%s659_s21 + $0x38] sm:$0xff]  ;;  %v700_v22 = vld [vmem:[%s659_s21 + $0x40] sm:$0xff] }
  0x11   : > { %v215_v21 = vsel %vm203_vm1, %v690_v16, 0.0  ;;  %v217_v24 = vsel %vm203_vm1, %v695_v19, 0.0  ;;  %v705_v25 = vld [vmem:[%s659_s21 + $0x48] sm:$0xff]  ;;  %v219_v27 = vsel %vm203_vm1, %v700_v22, 0.0  ;;  %v710_v28 = vld [vmem:[%s659_s21 + $0x50] sm:$0xff]  ;;  %v715_v31 = vld [vmem:[%s659_s21 + $0x58] sm:$0xff] }
  0x12   : > { %v208_v14 = vadd.f32 %v207_v9, %v206_v11  ;;  %v221_v30 = vsel %vm203_vm1, %v705_v25, 0.0  ;;  %v223_v33 = vsel %vm203_vm1, %v710_v28, 0.0  ;;  %v720_v34 = vld [vmem:[%s659_s21 + $0x60] sm:$0xff]  ;;  %v225_v36 = vsel %vm203_vm1, %v715_v31, 0.0  ;;  %v725_v37 = vld [vmem:[%s659_s21 + $0x68] sm:$0xff]  ;;  %v730_v40 = vld [vmem:[%s659_s21 + $0x70] sm:$0xff] }
  0x13   : > { %v227_v39 = vsel %vm203_vm1, %v720_v34, 0.0  ;;  %v229_v42 = vsel %vm203_vm1, %v725_v37, 0.0  ;;  %v735_v43 = vld [vmem:[%s659_s21 + $0x78] sm:$0xff]  ;;  %v231_v45 = vsel %vm203_vm1, %v730_v40, 0.0  ;;  %v740_v46 = vld [vmem:[%s659_s21 + $0x80] sm:$0xff]  ;;  %v745_v49 = vld [vmem:[%s659_s21 + $0x88] sm:$0xff] }
  0x14   : > { %v210_v17 = vadd.f32 %v209_v12, %v208_v14  ;;  %v233_v48 = vsel %vm203_vm1, %v735_v43, 0.0  ;;  %v235_v51 = vsel %vm203_vm1, %v740_v46, 0.0  ;;  %v750_v52 = vld [vmem:[%s659_s21 + $0x90] sm:$0xff]  ;;  %v237_v54 = vsel %vm203_vm1, %v745_v49, 0.0  ;;  %v755_v55 = vld [vmem:[%s659_s21 + $0x98] sm:$0xff]  ;;  %v760_v58 = vld [vmem:[%s659_s21 + $0xa0] sm:$0xff] }
  0x15   : > { %v239_v57 = vsel %vm203_vm1, %v750_v52, 0.0  ;;  %v241_v60 = vsel %vm203_vm1, %v755_v55, 0.0  ;;  %v765_v61 = vld [vmem:[%s659_s21 + $0xa8] sm:$0xff]  ;;  %v243_v63 = vsel %vm203_vm1, %v760_v58, 0.0  ;;  %v770_v0 = vld [vmem:[%s659_s21 + $0xb0] sm:$0xff]  ;;  %v775_v7 = vld [vmem:[%s659_s21 + $0xb8] sm:$0xff] }
  0x16   : > { %v212_v20 = vadd.f32 %v211_v15, %v210_v17  ;;  %v245_v2 = vsel %vm203_vm1, %v765_v61, 0.0  ;;  %v247_v9 = vsel %vm203_vm1, %v770_v0, 0.0  ;;  %v780_v11 = vld [vmem:[%s659_s21 + $0xc0] sm:$0xff]  ;;  %v249_v14 = vsel %vm203_vm1, %v775_v7, 0.0  ;;  %v785_v15 = vld [vmem:[%s659_s21 + $0xc8] sm:$0xff] }
  0x18   : > { %v214_v23 = vadd.f32 %v213_v18, %v212_v20  ;;  %v251_v18 = vsel %vm203_vm1, %v780_v11, 0.0  ;;  %v790_v20 = vld [vmem:[%s659_s21 + $0xd0] sm:$0xff] }
  0x1a   : > { %v216_v26 = vadd.f32 %v215_v21, %v214_v23  ;;  %v253_v23 = vsel %vm203_vm1, %v785_v15, 0.0 }
  0x1c   : > { %v218_v29 = vadd.f32 %v217_v24, %v216_v26  ;;  %v795_v24 = vld [vmem:[%s659_s21 + $0xd8] sm:$0xff] }
  0x1e   : > { %v220_v32 = vadd.f32 %v219_v27, %v218_v29  ;;  %v255_v27 = vsel %vm203_vm1, %v790_v20, 0.0  ;;  %v800_v29 = vld [vmem:[%s659_s21 + $0xe0] sm:$0xff] }
  0x20   : > { %v222_v35 = vadd.f32 %v221_v30, %v220_v32  ;;  %v257_v32 = vsel %vm203_vm1, %v795_v24, 0.0 }
  0x22   : > { %v224_v38 = vadd.f32 %v223_v33, %v222_v35  ;;  %v805_v33 = vld [vmem:[%s659_s21 + $0xe8] sm:$0xff] }
  0x24   : > { %v226_v41 = vadd.f32 %v225_v36, %v224_v38  ;;  %v259_v36 = vsel %vm203_vm1, %v800_v29, 0.0  ;;  %v810_v38 = vld [vmem:[%s659_s21 + $0xf0] sm:$0xff] }
  0x26   : > { %v228_v44 = vadd.f32 %v227_v39, %v226_v41  ;;  %v261_v41 = vsel %vm203_vm1, %v805_v33, 0.0 }
  0x28   : > { %v230_v47 = vadd.f32 %v229_v42, %v228_v44  ;;  %v815_v42 = vld [vmem:[%s659_s21 + $0xf8] sm:$0xff] }
  0x2a   : > { %v232_v50 = vadd.f32 %v231_v45, %v230_v47  ;;  %v263_v45 = vsel %vm203_vm1, %v810_v38, 0.0 }
  0x2c   : > { %v234_v53 = vadd.f32 %v233_v48, %v232_v50  ;;  %v265_v48 = vsel %vm203_vm1, %v815_v42, 0.0 }
  0x2e   : > { %v236_v56 = vadd.f32 %v235_v51, %v234_v53 }
  0x30   : > { %v238_v59 = vadd.f32 %v237_v54, %v236_v56 }
  0x32   : > { %v240_v62 = vadd.f32 %v239_v57, %v238_v59 }
  0x34   : > { %v242_v1 = vadd.f32 %v241_v60, %v240_v62 }
  0x36   : > { %v244_v8 = vadd.f32 %v243_v63, %v242_v1  ;;  %v351_v63 = vld [vmem:[%s933_s2] sm:$0x3] }
  0x37   : > { %589 = vmatpush3.msk.msra.mxu1 %vm356_vm2, %v351_v63 }
  0x38   : > { %v246_v12 = vadd.f32 %v245_v2, %v244_v8 }
  0x3a   : > { %v248_v17 = vadd.f32 %v247_v9, %v246_v12 }
  0x3c   : > { %v250_v21 = vadd.f32 %v249_v14, %v248_v17 }
  0x3e   : > { %v252_v26 = vadd.f32 %v251_v18, %v250_v21  ;;  %v436_v21 = vlaneseq }
  0x40   : > { %v254_v30 = vadd.f32 %v253_v23, %v252_v26  ;;  %v437_v23 = vshrl.u32 %v436_v21, 7 }
  0x42   : > { %v256_v35 = vadd.f32 %v255_v27, %v254_v30  ;;  %v438_v26 = vsub.s32 0, %v437_v23 }
  0x44   : > { %v258_v39 = vadd.f32 %v257_v32, %v256_v35 }
  0x46   : > { %v260_v44 = vadd.f32 %v259_v36, %v258_v39 }
  0x48   : > { %v262_v47 = vadd.f32 %v261_v41, %v260_v44 }
  0x4a   : > { %v264_v50 = vadd.f32 %v263_v45, %v262_v47 }
  0x4c   : > { %v266_v51 = vadd.f32 %v265_v48, %v264_v50 }
  0x4e   : > { %v267_v53 = vrot.slane %v266_v51, 4 }
  0x50   : > { %v268_v54 = vadd.f32 %v267_v53, %v266_v51 }
  0x52   : > { %v269_v56 = vrot.slane %v268_v54, 2 }
  0x54   : > { %v270_v57 = vadd.f32 %v269_v56, %v268_v54 }
  0x56   : > { %v271_v59 = vrot.slane %v270_v57, 1 }
  0x58   : > { %v272_v60 = vadd.f32 %v271_v59, %v270_v57 }
  0x5a   : > { %v274_v62 = vmul.f32 0.00390625, %v272_v60 }
  0x5c   : > { %586 = vmatmul.mubr.msk.f32.vlgmr.msra.gmra.mxu0 %vm203_vm1, %v274_v62 }
 0x11c   : > { %v346_v1 = vpop.f32.mrf.mxu0 }
 0x11d   : > { %v350_v2 = vmax.f32 %v346_v1, 0.0 }
 0x11e   : > { %v587_v8 = vpop.f32.mrf.mxu0 }
 0x11f   : > { %591 = vmatmul.mubr.msk.f32.vlgmr.msra.gmra.mxu1 %vm352_vm3, %v350_v2 }
 0x1df   : > { %v426_v9 = vpop.f32.mrf.mxu1 }
 0x1e0   : > { %v571_v12 = vmul.f32 -1.442695, %v426_v9 }
 0x1e1   : > { %v592_v14 = vpop.f32.mrf.mxu1 }
 0x1e2   : > { %603 = vpow2.f32 %v571_v12 }
 0x1ef   : > { %v604_v17 = vpop.eup %603 }
 0x1f0   : > { %v433_v18 = vadd.f32 1.0, %v604_v17 }
 0x1f2   : > { %605 = vrcp.f32 %v433_v18 }
 0x1ff   : > { %v606_v27 = vpop.eup %605 }
 0x200   : > { %v439_v30 = vrot.slane %v606_v27, %v438_v26 }
 0x202   : > { %v440_v32 = vmul.f32 %v439_v30, %v662_v3  ;;  %v441_v35 = vmul.f32 %v439_v30, %v665_v4  ;;  %v442_v36 = vmul.f32 %v439_v30, %v668_v5  ;;  %v443_v39 = vmul.f32 %v439_v30, %v671_v6 }
 0x203   : > { %v444_v41 = vmul.f32 %v439_v30, %v680_v10  ;;  %v445_v44 = vmul.f32 %v439_v30, %v685_v13  ;;  %v446_v45 = vmul.f32 %v439_v30, %v690_v16  ;;  %v447_v47 = vmul.f32 %v439_v30, %v695_v19 }
 0x204   : > { %v448_v3 = vmul.f32 %v439_v30, %v700_v22  ;;  %v449_v4 = vmul.f32 %v439_v30, %v705_v25  ;;  %v450_v5 = vmul.f32 %v439_v30, %v710_v28  ;;  %v451_v6 = vmul.f32 %v439_v30, %v715_v31  ;;  %472 = vst.msk [vmem:[%s830_s26] sm:$0xff] %vm203_vm1, %v440_v32 }
 0x205   : > { %473 = vst.msk [vmem:[%s830_s26 + $0x8] sm:$0xff] %vm203_vm1, %v441_v35  ;;  %474 = vst.msk [vmem:[%s830_s26 + $0x10] sm:$0xff] %vm203_vm1, %v442_v36  ;;  %v452_v10 = vmul.f32 %v439_v30, %v720_v34  ;;  %v453_v13 = vmul.f32 %v439_v30, %v725_v37  ;;  %v454_v16 = vmul.f32 %v439_v30, %v730_v40 }
 0x206   : > { %475 = vst.msk [vmem:[%s830_s26 + $0x18] sm:$0xff] %vm203_vm1, %v443_v39  ;;  %v455_v19 = vmul.f32 %v439_v30, %v735_v43  ;;  %476 = vst.msk [vmem:[%s830_s26 + $0x20] sm:$0xff] %vm203_vm1, %v444_v41  ;;  %v456_v22 = vmul.f32 %v439_v30, %v740_v46  ;;  %v457_v25 = vmul.f32 %v439_v30, %v745_v49 }
 0x207   : > { %477 = vst.msk [vmem:[%s830_s26 + $0x28] sm:$0xff] %vm203_vm1, %v445_v44  ;;  %478 = vst.msk [vmem:[%s830_s26 + $0x30] sm:$0xff] %vm203_vm1, %v446_v45  ;;  %v458_v28 = vmul.f32 %v439_v30, %v750_v52  ;;  %v459_v31 = vmul.f32 %v439_v30, %v755_v55  ;;  %v460_v34 = vmul.f32 %v439_v30, %v760_v58 }
 0x208   : > { %479 = vst.msk [vmem:[%s830_s26 + $0x38] sm:$0xff] %vm203_vm1, %v447_v47  ;;  %480 = vst.msk [vmem:[%s830_s26 + $0x40] sm:$0xff] %vm203_vm1, %v448_v3  ;;  %v461_v37 = vmul.f32 %v439_v30, %v765_v61  ;;  %v462_v40 = vmul.f32 %v439_v30, %v770_v0  ;;  %v463_v43 = vmul.f32 %v439_v30, %v775_v7 }
 0x209   : > { %481 = vst.msk [vmem:[%s830_s26 + $0x48] sm:$0xff] %vm203_vm1, %v449_v4  ;;  %482 = vst.msk [vmem:[%s830_s26 + $0x50] sm:$0xff] %vm203_vm1, %v450_v5  ;;  %v464_v46 = vmul.f32 %v439_v30, %v780_v11  ;;  %v465_v49 = vmul.f32 %v439_v30, %v785_v15  ;;  %v466_v52 = vmul.f32 %v439_v30, %v790_v20 }
 0x20a   : > { %483 = vst.msk [vmem:[%s830_s26 + $0x58] sm:$0xff] %vm203_vm1, %v451_v6  ;;  %484 = vst.msk [vmem:[%s830_s26 + $0x60] sm:$0xff] %vm203_vm1, %v452_v10  ;;  %v467_v55 = vmul.f32 %v439_v30, %v795_v24  ;;  %v468_v58 = vmul.f32 %v439_v30, %v800_v29  ;;  %v469_v61 = vmul.f32 %v439_v30, %v805_v33 }
 0x20b   : > { %485 = vst.msk [vmem:[%s830_s26 + $0x68] sm:$0xff] %vm203_vm1, %v453_v13  ;;  %486 = vst.msk [vmem:[%s830_s26 + $0x70] sm:$0xff] %vm203_vm1, %v454_v16  ;;  %v470_v0 = vmul.f32 %v439_v30, %v810_v38  ;;  %v471_v7 = vmul.f32 %v439_v30, %v815_v42 }
 0x20c   : > { %487 = vst.msk [vmem:[%s830_s26 + $0x78] sm:$0xff] %vm203_vm1, %v455_v19  ;;  %488 = vst.msk [vmem:[%s830_s26 + $0x80] sm:$0xff] %vm203_vm1, %v456_v22 }
 0x20d   : > { %489 = vst.msk [vmem:[%s830_s26 + $0x88] sm:$0xff] %vm203_vm1, %v457_v25  ;;  %490 = vst.msk [vmem:[%s830_s26 + $0x90] sm:$0xff] %vm203_vm1, %v458_v28 }
 0x20e   : > { %491 = vst.msk [vmem:[%s830_s26 + $0x98] sm:$0xff] %vm203_vm1, %v459_v31  ;;  %492 = vst.msk [vmem:[%s830_s26 + $0xa0] sm:$0xff] %vm203_vm1, %v460_v34 }
 0x20f   : > { %493 = vst.msk [vmem:[%s830_s26 + $0xa8] sm:$0xff] %vm203_vm1, %v461_v37  ;;  %494 = vst.msk [vmem:[%s830_s26 + $0xb0] sm:$0xff] %vm203_vm1, %v462_v40 }
 0x210   : > { %495 = vst.msk [vmem:[%s830_s26 + $0xb8] sm:$0xff] %vm203_vm1, %v463_v43  ;;  %496 = vst.msk [vmem:[%s830_s26 + $0xc0] sm:$0xff] %vm203_vm1, %v464_v46 }
 0x211   : > { %497 = vst.msk [vmem:[%s830_s26 + $0xc8] sm:$0xff] %vm203_vm1, %v465_v49  ;;  %498 = vst.msk [vmem:[%s830_s26 + $0xd0] sm:$0xff] %vm203_vm1, %v466_v52 }
 0x212   : > { %499 = vst.msk [vmem:[%s830_s26 + $0xd8] sm:$0xff] %vm203_vm1, %v467_v55  ;;  %500 = vst.msk [vmem:[%s830_s26 + $0xe0] sm:$0xff] %vm203_vm1, %v468_v58 }
 0x213   : > { %501 = vst.msk [vmem:[%s830_s26 + $0xe8] sm:$0xff] %vm203_vm1, %v469_v61  ;;  %502 = vst.msk [vmem:[%s830_s26 + $0xf0] sm:$0xff] %vm203_vm1, %v470_v0 }
 0x214   : > { %503 = vst.msk [vmem:[%s830_s26 + $0xf8] sm:$0xff] %vm203_vm1, %v471_v7 }
 0x215 PF: > { %s13_s12 = sadd.s32 1, %s613_s12  }
 0x216   : > { %p10_p4 = scmp.ge.s32.totalorder %s13_s12, 4  }
 0x218   :  { %12 = sbr.rel (!%p10_p4) target bundleno = 1 (0x1), region = 62 }

</bundles_post_ra>
